<compile_context>
chip_gen: v7x
topology: tpu7x:2x2x1
jax: 0.10.0
libtpu: 0.0.40
codegen_flags: <defaults>
</compile_context>

<pallas_src>
import functools
import math

import jax
import jax.numpy as jnp
from jax.experimental import pallas as pl
from jax.experimental.pallas import tpu as pltpu


def _pick_tile(n, target):
    """Largest multiple-of-8 tile <= target that divides n; else the full dim."""
    t = (min(target, n) // 8) * 8
    while t >= 8:
        if n % t == 0:
            return t
        t -= 8
    return n  # full dim is always a legal block size


# ------------------------------------------------------------- projections
def qkv_proj_kernel(x_ref, wq_ref, wk_ref, wv_ref, bq_ref, bk_ref, bv_ref,
                    q_ref, k_ref, v_ref, *, scale):
    x = x_ref[...]                                    # (ts, E) bf16 -> MXU as-is

    def proj(w_ref, b_ref):
        acc = jnp.dot(x, w_ref[...], preferred_element_type=jnp.float32)
        return acc + b_ref[...].astype(jnp.float32)   # (ts, E) f32

    # fold 1/sqrt(head_dim) into q here (S*E multiplies instead of H*S*S)
    q_ref[...] = (proj(wq_ref, bq_ref) * scale).astype(q_ref.dtype)
    k_ref[...] = proj(wk_ref, bk_ref).astype(k_ref.dtype)
    v_ref[...] = proj(wv_ref, bv_ref).astype(v_ref.dtype)


def out_proj_kernel(x_ref, w_ref, b_ref, o_ref):
    acc = jnp.dot(x_ref[...], w_ref[...], preferred_element_type=jnp.float32)
    o_ref[...] = (acc + b_ref[...].astype(jnp.float32)).astype(o_ref.dtype)


# --------------------------------------------------------- flash attention
def flash_kernel(q_ref, k_ref, v_ref, o_ref, m_sc, l_sc, acc_sc):
    tq = q_ref.shape[1]
    tk = k_ref.shape[1]
    qi = pl.program_id(1)
    ki = pl.program_id(2)

    @pl.when(ki == 0)
    def _init():
        m_sc[...] = jnp.full(m_sc.shape, -1e30, m_sc.dtype)
        l_sc[...] = jnp.zeros(l_sc.shape, l_sc.dtype)
        acc_sc[...] = jnp.zeros(acc_sc.shape, acc_sc.dtype)

    # Skip key tiles that lie entirely in the (causally masked) future.
    @pl.when(ki * tk <= qi * tq + (tq - 1))
    def _compute():
        q = q_ref[...]                                # (1, tq, D) bf16, pre-scaled
        k = k_ref[...]                                # (1, tk, D) bf16
        v = v_ref[...]                                # (1, tk, D) bf16
        # head-batched A.B^T contraction directly on the MXU (no explicit .T)
        s = jnp.einsum('bqd,bkd->bqk', q, k,
                       preferred_element_type=jnp.float32)          # (1, tq, tk)
        rows = qi * tq + jax.lax.broadcasted_iota(jnp.int32, (1, tq, tk), 1)
        cols = ki * tk + jax.lax.broadcasted_iota(jnp.int32, (1, tq, tk), 2)
        s = s + jnp.where(cols > rows, -10000.0, 0.0)  # same soft mask as torch

        m_prev = m_sc[...]
        m_new = jnp.maximum(m_prev, jnp.max(s, axis=-1, keepdims=True))
        alpha = jnp.exp(m_prev - m_new)
        p = jnp.exp(s - m_new)                         # softmax math stays f32
        l_sc[...] = alpha * l_sc[...] + jnp.sum(p, axis=-1, keepdims=True)
        acc_sc[...] = alpha * acc_sc[...] + jnp.einsum(
            'bqk,bkd->bqd', p.astype(v.dtype), v,      # bf16 into the MXU
            preferred_element_type=jnp.float32)
        m_sc[...] = m_new

    @pl.when(ki == pl.num_programs(2) - 1)
    def _finalize():
        inv = pl.reciprocal(l_sc[...], approx=True)    # EUP slot, ~free
        o_ref[...] = (acc_sc[...] * inv).astype(o_ref.dtype)


# ------------------------------------------------------------------ wrapper
def mha_forward(x, w_qkv, b_qkv, w_out, b_out, *, num_heads, return_kv=False):
    """x: (1, S, E) bf16 -> (1, S, E) bf16 (optionally also K, V as (S, H, D))."""
    x2 = x[0]
    S, E = x2.shape
    H = num_heads
    D = E // H
    scale = 1.0 / math.sqrt(D)

    # host-side, one-time weight/bias split: (E, 3E) -> three (E, E)
    wq, wk, wv = w_qkv[:, :E], w_qkv[:, E:2 * E], w_qkv[:, 2 * E:]
    bq = b_qkv[:E].reshape(1, E)
    bk = b_qkv[E:2 * E].reshape(1, E)
    bv = b_qkv[2 * E:].reshape(1, E)

    ts = _pick_tile(S, 256)
    row_map = lambda i: (i, 0)
    resident = lambda i: (0, 0)

    # ---- 1) QKV projection (x read once, weights resident in VMEM) ----
    q, k, v = pl.pallas_call(
        functools.partial(qkv_proj_kernel, scale=scale),
        grid=(S // ts,),
        in_specs=[pl.BlockSpec((ts, E), row_map),
                  pl.BlockSpec((E, E), resident),
                  pl.BlockSpec((E, E), resident),
                  pl.BlockSpec((E, E), resident),
                  pl.BlockSpec((1, E), resident),
                  pl.BlockSpec((1, E), resident),
                  pl.BlockSpec((1, E), resident)],
        out_specs=(pl.BlockSpec((ts, E), row_map),
                   pl.BlockSpec((ts, E), row_map),
                   pl.BlockSpec((ts, E), row_map)),
        out_shape=(jax.ShapeDtypeStruct((S, E), jnp.bfloat16),
                   jax.ShapeDtypeStruct((S, E), jnp.bfloat16),
                   jax.ShapeDtypeStruct((S, E), jnp.bfloat16)),
        compiler_params=pltpu.CompilerParams(dimension_semantics=("parallel",)),
        cost_estimate=pl.CostEstimate(
            flops=2 * S * E * 3 * E, transcendentals=0,
            bytes_accessed=2 * (4 * S * E + 3 * E * E + 3 * E)),
    )(x2, wq, wk, wv, bq, bk, bv)

    # head-major layout for the attention kernel (XLA layout plumbing only)
    q_h = q.reshape(S, H, D).transpose(1, 0, 2)        # (H, S, D)
    k_h = k.reshape(S, H, D).transpose(1, 0, 2)
    v_h = v.reshape(S, H, D).transpose(1, 0, 2)

    # NOTE: 256-row tiles keep the v6e MXU busy; on v7x (64 MiB VMEM) this
    # still fits comfortably since per-block VMEM is O(tq*tk + tq*D).
    tq = _pick_tile(S, 256)
    tk = _pick_tile(S, 256)

    # ---- 2) flash attention over (heads, q tiles, k tiles) ----
    attn_h = pl.pallas_call(
        flash_kernel,
        grid=(H, S // tq, S // tk),
        in_specs=[pl.BlockSpec((1, tq, D), lambda h, i, j: (h, i, 0)),
                  pl.BlockSpec((1, tk, D), lambda h, i, j: (h, j, 0)),
                  pl.BlockSpec((1, tk, D), lambda h, i, j: (h, j, 0))],
        out_specs=pl.BlockSpec((1, tq, D), lambda h, i, j: (h, i, 0)),
        out_shape=jax.ShapeDtypeStruct((H, S, D), jnp.bfloat16),
        scratch_shapes=[pltpu.VMEM((1, tq, 1), jnp.float32),   # running max
                        pltpu.VMEM((1, tq, 1), jnp.float32),   # running sum
                        pltpu.VMEM((1, tq, D), jnp.float32)],  # output acc
        compiler_params=pltpu.CompilerParams(
            dimension_semantics=("parallel", "parallel", "arbitrary")),
        cost_estimate=pl.CostEstimate(
            flops=4 * H * S * S * D, transcendentals=H * S * S,
            bytes_accessed=2 * 4 * H * S * D),
    )(q_h, k_h, v_h)

    attn = attn_h.transpose(1, 0, 2).reshape(S, E)     # back to (S, E), lane-dense

    # ---- 3) output projection ----
    out = pl.pallas_call(
        out_proj_kernel,
        grid=(S // ts,),
        in_specs=[pl.BlockSpec((ts, E), row_map),
                  pl.BlockSpec((E, E), resident),
                  pl.BlockSpec((1, E), resident)],
        out_specs=pl.BlockSpec((ts, E), row_map),
        out_shape=jax.ShapeDtypeStruct((S, E), jnp.bfloat16),
        compiler_params=pltpu.CompilerParams(dimension_semantics=("parallel",)),
        cost_estimate=pl.CostEstimate(
            flops=2 * S * E * E, transcendentals=0,
            bytes_accessed=2 * (2 * S * E + E * E + E)),
    )(attn, w_out, b_out.reshape(1, E))

    out = out.reshape(1, S, E)
    if return_kv:
        # exactly what the PyTorch module writes into kv_cache[0,:S] / [1,:S]
        return out, k.reshape(S, H, D), v.reshape(S, H, D)
    return out


# ---------------------------------------------------------------- reference
def mha_reference(x, w_qkv, b_qkv, w_out, b_out, *, num_heads):
    """Pure-JAX f32 reference mirroring the PyTorch forward."""
    x2 = x[0].astype(jnp.float32)
    S, E = x2.shape
    D = E // num_heads
    qkv = x2 @ w_qkv.astype(jnp.float32) + b_qkv.astype(jnp.float32)
    qkv = qkv.reshape(S, 3, num_heads, D).transpose(1, 0, 2, 3)
    q, k, v = qkv[0], qkv[1], qkv[2]
    scores = jnp.einsum('bhe,she->bsh', q, k) / math.sqrt(D)
    mask = jnp.triu(jnp.full((S, S), -10000.0, jnp.float32), 1)[:, :, None]
    scores = scores + mask
    p = jax.nn.softmax(scores, axis=1)
    vals = jnp.einsum('bsh,she->bhe', p, v).reshape(S, E)
    out = vals @ w_out.astype(jnp.float32) + b_out.astype(jnp.float32)
    return (out.astype(jnp.bfloat16).reshape(1, S, E),
            k.astype(jnp.bfloat16), v.astype(jnp.bfloat16))


if __name__ == "__main__":
    embedding_dim = 32
    num_heads = 4
    seq_len = 8

    key = jax.random.PRNGKey(0)
    kx, kw1, kb1, kw2, kb2 = jax.random.split(key, 5)

    # deterministic parameter init (PyTorch Linear-style uniform bounds), bf16
    bound = 1.0 / math.sqrt(embedding_dim)
    x = jax.random.normal(kx, (1, seq_len, embedding_dim),
                          jnp.float32).astype(jnp.bfloat16)
    # weights stored pre-transposed as (in, out)
    w_qkv = jax.random.uniform(kw1, (embedding_dim, 3 * embedding_dim),
                               jnp.float32, -bound, bound).astype(jnp.bfloat16)
    b_qkv = jax.random.uniform(kb1, (3 * embedding_dim,),
                               jnp.float32, -bound, bound).astype(jnp.bfloat16)
    w_out = jax.random.uniform(kw2, (embedding_dim, embedding_dim),
                               jnp.float32, -bound, bound).astype(jnp.bfloat16)
    b_out = jax.random.uniform(kb2, (embedding_dim,),
                               jnp.float32, -bound, bound).astype(jnp.bfloat16)

    fwd = jax.jit(functools.partial(mha_forward, num_heads=num_heads,
                                    return_kv=True))
    out, k_cache, v_cache = jax.block_until_ready(
        fwd(x, w_qkv, b_qkv, w_out, b_out))

    ref_out, ref_k, ref_v = mha_reference(x, w_qkv, b_qkv, w_out, b_out,
                                          num_heads=num_heads)

    assert out.shape == (1, seq_len, embedding_dim) and out.dtype == jnp.bfloat16
    assert k_cache.shape == (seq_len, num_heads, embedding_dim // num_heads)
    assert jnp.allclose(out.astype(jnp.float32), ref_out.astype(jnp.float32),
                        atol=2e-2, rtol=2e-2)
    assert jnp.allclose(k_cache.astype(jnp.float32), ref_k.astype(jnp.float32),
                        atol=2e-2, rtol=2e-2)
    assert jnp.allclose(v_cache.astype(jnp.float32), ref_v.astype(jnp.float32),
                        atol=2e-2, rtol=2e-2)

    print("KERNEL_OK")
</pallas_src>

<mosaic_0001>
module attributes {stable_mosaic.version = 11 : i64} {
  func.func @qkv_proj_kernel(%arg0: i32, %arg1: memref<8x32xbf16, #tpu.memory_space<vmem>>, %arg2: memref<32x32xbf16, #tpu.memory_space<vmem>>, %arg3: memref<32x32xbf16, #tpu.memory_space<vmem>>, %arg4: memref<32x32xbf16, #tpu.memory_space<vmem>>, %arg5: memref<1x32xbf16, #tpu.memory_space<vmem>>, %arg6: memref<1x32xbf16, #tpu.memory_space<vmem>>, %arg7: memref<1x32xbf16, #tpu.memory_space<vmem>>, %arg8: memref<8x32xbf16, #tpu.memory_space<vmem>>, %arg9: memref<8x32xbf16, #tpu.memory_space<vmem>>, %arg10: memref<8x32xbf16, #tpu.memory_space<vmem>>) attributes {dimension_semantics = [#tpu.dimension_semantics<parallel>], iteration_bounds = array<i64: 1>, scalar_prefetch = 0 : i64, scratch_operands = 0 : i64, tpu.core_type = #tpu.core_type<tc>, window_params = [{transform_indices = @transform_0, window_bounds = array<i64: 8, 32>}, {pipeline_mode = #tpu.pipeline_mode<synchronous>, transform_indices = @transform_1, window_bounds = array<i64: 32, 32>}, {pipeline_mode = #tpu.pipeline_mode<synchronous>, transform_indices = @transform_2, window_bounds = array<i64: 32, 32>}, {pipeline_mode = #tpu.pipeline_mode<synchronous>, transform_indices = @transform_3, window_bounds = array<i64: 32, 32>}, {pipeline_mode = #tpu.pipeline_mode<synchronous>, transform_indices = @transform_4, window_bounds = array<i64: 1, 32>}, {pipeline_mode = #tpu.pipeline_mode<synchronous>, transform_indices = @transform_5, window_bounds = array<i64: 1, 32>}, {pipeline_mode = #tpu.pipeline_mode<synchronous>, transform_indices = @transform_6, window_bounds = array<i64: 1, 32>}, {transform_indices = @transform_7, window_bounds = array<i64: 8, 32>}, {transform_indices = @transform_8, window_bounds = array<i64: 8, 32>}, {transform_indices = @transform_9, window_bounds = array<i64: 8, 32>}]} {
    %c0 = arith.constant 0 : index
    %c0_0 = arith.constant 0 : index
    %0 = vector.load %arg1[%c0, %c0_0] : memref<8x32xbf16, #tpu.memory_space<vmem>>, vector<8x32xbf16>
    %c0_1 = arith.constant 0 : index
    %c0_2 = arith.constant 0 : index
    %1 = vector.load %arg2[%c0_1, %c0_2] : memref<32x32xbf16, #tpu.memory_space<vmem>>, vector<32x32xbf16>
    %cst = arith.constant dense<0.000000e+00> : vector<8x32xf32>
    %2 = tpu.matmul %0, %1, %cst {dimension_numbers = #tpu.dot_dimension_numbers<[1], [0], [0], [1], [0, 0, 1, 1], [], []>} : vector<8x32xbf16>, vector<32x32xbf16>, vector<8x32xf32> -> vector<8x32xf32>
    %c0_3 = arith.constant 0 : index
    %c0_4 = arith.constant 0 : index
    %3 = vector.load %arg5[%c0_3, %c0_4] : memref<1x32xbf16, #tpu.memory_space<vmem>>, vector<1x32xbf16>
    %4 = arith.extf %3 : vector<1x32xbf16> to vector<1x32xf32>
    %5 = vector.broadcast %4 : vector<1x32xf32> to vector<8x32xf32>
    %6 = arith.addf %2, %5 : vector<8x32xf32>
    %cst_5 = arith.constant 0.353553385 : f32
    %7 = vector.broadcast %cst_5 : f32 to vector<8x32xf32>
    %8 = arith.mulf %6, %7 : vector<8x32xf32>
    %9 = arith.truncf %8 : vector<8x32xf32> to vector<8x32xbf16>
    %c0_6 = arith.constant 0 : index
    %c0_7 = arith.constant 0 : index
    %10 = vector.load %arg8[%c0_6, %c0_7] : memref<8x32xbf16, #tpu.memory_space<vmem>>, vector<8x32xbf16>
    tpu.vector_store %arg8[%c0_6, %c0_7], %9 {strides = array<i32>} : memref<8x32xbf16, #tpu.memory_space<vmem>>, vector<8x32xbf16>,
    %c0_8 = arith.constant 0 : index
    %c0_9 = arith.constant 0 : index
    %11 = vector.load %arg3[%c0_8, %c0_9] : memref<32x32xbf16, #tpu.memory_space<vmem>>, vector<32x32xbf16>
    %cst_10 = arith.constant dense<0.000000e+00> : vector<8x32xf32>
    %12 = tpu.matmul %0, %11, %cst_10 {dimension_numbers = #tpu.dot_dimension_numbers<[1], [0], [0], [1], [0, 0, 1, 1], [], []>} : vector<8x32xbf16>, vector<32x32xbf16>, vector<8x32xf32> -> vector<8x32xf32>
    %c0_11 = arith.constant 0 : index
    %c0_12 = arith.constant 0 : index
    %13 = vector.load %arg6[%c0_11, %c0_12] : memref<1x32xbf16, #tpu.memory_space<vmem>>, vector<1x32xbf16>
    %14 = arith.extf %13 : vector<1x32xbf16> to vector<1x32xf32>
    %15 = vector.broadcast %14 : vector<1x32xf32> to vector<8x32xf32>
    %16 = arith.addf %12, %15 : vector<8x32xf32>
    %17 = arith.truncf %16 : vector<8x32xf32> to vector<8x32xbf16>
    %c0_13 = arith.constant 0 : index
    %c0_14 = arith.constant 0 : index
    %18 = vector.load %arg9[%c0_13, %c0_14] : memref<8x32xbf16, #tpu.memory_space<vmem>>, vector<8x32xbf16>
    tpu.vector_store %arg9[%c0_13, %c0_14], %17 {strides = array<i32>} : memref<8x32xbf16, #tpu.memory_space<vmem>>, vector<8x32xbf16>,
    %c0_15 = arith.constant 0 : index
    %c0_16 = arith.constant 0 : index
    %19 = vector.load %arg4[%c0_15, %c0_16] : memref<32x32xbf16, #tpu.memory_space<vmem>>, vector<32x32xbf16>
    %cst_17 = arith.constant dense<0.000000e+00> : vector<8x32xf32>
    %20 = tpu.matmul %0, %19, %cst_17 {dimension_numbers = #tpu.dot_dimension_numbers<[1], [0], [0], [1], [0, 0, 1, 1], [], []>} : vector<8x32xbf16>, vector<32x32xbf16>, vector<8x32xf32> -> vector<8x32xf32>
    %c0_18 = arith.constant 0 : index
    %c0_19 = arith.constant 0 : index
    %21 = vector.load %arg7[%c0_18, %c0_19] : memref<1x32xbf16, #tpu.memory_space<vmem>>, vector<1x32xbf16>
    %22 = arith.extf %21 : vector<1x32xbf16> to vector<1x32xf32>
    %23 = vector.broadcast %22 : vector<1x32xf32> to vector<8x32xf32>
    %24 = arith.addf %20, %23 : vector<8x32xf32>
    %25 = arith.truncf %24 : vector<8x32xf32> to vector<8x32xbf16>
    %c0_20 = arith.constant 0 : index
    %c0_21 = arith.constant 0 : index
    %26 = vector.load %arg10[%c0_20, %c0_21] : memref<8x32xbf16, #tpu.memory_space<vmem>>, vector<8x32xbf16>
    tpu.vector_store %arg10[%c0_20, %c0_21], %25 {strides = array<i32>} : memref<8x32xbf16, #tpu.memory_space<vmem>>, vector<8x32xbf16>,
    return
  }
  func.func @transform_0(%arg0: i32) -> (i32, i32) {
    %c0_i32 = arith.constant 0 : i32
    %c0_i32_0 = arith.constant 0 : i32
    return %arg0, %c0_i32 : i32, i32
  }
  func.func @transform_1(%arg0: i32) -> (i32, i32) {
    %c0_i32 = arith.constant 0 : i32
    %c0_i32_0 = arith.constant 0 : i32
    %c0_i32_1 = arith.constant 0 : i32
    return %c0_i32, %c0_i32_0 : i32, i32
  }
  func.func @transform_2(%arg0: i32) -> (i32, i32) {
    %c0_i32 = arith.constant 0 : i32
    %c0_i32_0 = arith.constant 0 : i32
    %c0_i32_1 = arith.constant 0 : i32
    return %c0_i32, %c0_i32_0 : i32, i32
  }
  func.func @transform_3(%arg0: i32) -> (i32, i32) {
    %c0_i32 = arith.constant 0 : i32
    %c0_i32_0 = arith.constant 0 : i32
    %c0_i32_1 = arith.constant 0 : i32
    return %c0_i32, %c0_i32_0 : i32, i32
  }
  func.func @transform_4(%arg0: i32) -> (i32, i32) {
    %c0_i32 = arith.constant 0 : i32
    %c0_i32_0 = arith.constant 0 : i32
    %c0_i32_1 = arith.constant 0 : i32
    return %c0_i32, %c0_i32_0 : i32, i32
  }
  func.func @transform_5(%arg0: i32) -> (i32, i32) {
    %c0_i32 = arith.constant 0 : i32
    %c0_i32_0 = arith.constant 0 : i32
    %c0_i32_1 = arith.constant 0 : i32
    return %c0_i32, %c0_i32_0 : i32, i32
  }
  func.func @transform_6(%arg0: i32) -> (i32, i32) {
    %c0_i32 = arith.constant 0 : i32
    %c0_i32_0 = arith.constant 0 : i32
    %c0_i32_1 = arith.constant 0 : i32
    return %c0_i32, %c0_i32_0 : i32, i32
  }
  func.func @transform_7(%arg0: i32) -> (i32, i32) {
    %c0_i32 = arith.constant 0 : i32
    %c0_i32_0 = arith.constant 0 : i32
    return %arg0, %c0_i32 : i32, i32
  }
  func.func @transform_8(%arg0: i32) -> (i32, i32) {
    %c0_i32 = arith.constant 0 : i32
    %c0_i32_0 = arith.constant 0 : i32
    return %arg0, %c0_i32 : i32, i32
  }
  func.func @transform_9(%arg0: i32) -> (i32, i32) {
    %c0_i32 = arith.constant 0 : i32
    %c0_i32_0 = arith.constant 0 : i32
    return %arg0, %c0_i32 : i32, i32
  }
}

module attributes {stable_mosaic.version = 11 : i64} {
  func.func @flash_kernel(%arg0: i32, %arg1: i32, %arg2: i32, %arg3: memref<1x8x8xbf16, #tpu.memory_space<vmem>>, %arg4: memref<1x8x8xbf16, #tpu.memory_space<vmem>>, %arg5: memref<1x8x8xbf16, #tpu.memory_space<vmem>>, %arg6: memref<1x8x8xbf16, #tpu.memory_space<vmem>>, %arg7: memref<1x8x1xf32, #tpu.memory_space<vmem>>, %arg8: memref<1x8x1xf32, #tpu.memory_space<vmem>>, %arg9: memref<1x8x8xf32, #tpu.memory_space<vmem>>) attributes {dimension_semantics = [#tpu.dimension_semantics<parallel>, #tpu.dimension_semantics<parallel>, #tpu.dimension_semantics<arbitrary>], iteration_bounds = array<i64: 4, 1, 1>, scalar_prefetch = 0 : i64, scratch_operands = 3 : i64, tpu.core_type = #tpu.core_type<tc>, window_params = [{transform_indices = @transform_0, window_bounds = array<i64: 1, 8, 8>}, {transform_indices = @transform_1, window_bounds = array<i64: 1, 8, 8>}, {transform_indices = @transform_2, window_bounds = array<i64: 1, 8, 8>}, {transform_indices = @transform_3, window_bounds = array<i64: 1, 8, 8>}]} {
    %c0_i32 = arith.constant 0 : i32
    %0 = arith.cmpi eq, %arg2, %c0_i32 : i32
    %1 = arith.extui %0 : i1 to i32
    %c0_i32_0 = arith.constant 0 : i32
    %2 = arith.cmpi ne, %1, %c0_i32_0 : i32
    scf.if %2 {
      %cst = arith.constant -1.000000e+30 : f32
      %12 = vector.broadcast %cst : f32 to vector<1x8x1xf32>
      %c0 = arith.constant 0 : index
      %c0_5 = arith.constant 0 : index
      %c0_6 = arith.constant 0 : index
      %13 = vector.load %arg7[%c0, %c0_5, %c0_6] : memref<1x8x1xf32, #tpu.memory_space<vmem>>, vector<1x8x1xf32>
      tpu.vector_store %arg7[%c0, %c0_5, %c0_6], %12 {strides = array<i32>} : memref<1x8x1xf32, #tpu.memory_space<vmem>>, vector<1x8x1xf32>,
      %cst_7 = arith.constant 0.000000e+00 : f32
      %14 = vector.broadcast %cst_7 : f32 to vector<1x8x1xf32>
      %c0_8 = arith.constant 0 : index
      %c0_9 = arith.constant 0 : index
      %c0_10 = arith.constant 0 : index
      %15 = vector.load %arg8[%c0_8, %c0_9, %c0_10] : memref<1x8x1xf32, #tpu.memory_space<vmem>>, vector<1x8x1xf32>
      tpu.vector_store %arg8[%c0_8, %c0_9, %c0_10], %14 {strides = array<i32>} : memref<1x8x1xf32, #tpu.memory_space<vmem>>, vector<1x8x1xf32>,
      %cst_11 = arith.constant 0.000000e+00 : f32
      %16 = vector.broadcast %cst_11 : f32 to vector<1x8x8xf32>
      %c0_12 = arith.constant 0 : index
      %c0_13 = arith.constant 0 : index
      %c0_14 = arith.constant 0 : index
      %17 = vector.load %arg9[%c0_12, %c0_13, %c0_14] : memref<1x8x8xf32, #tpu.memory_space<vmem>>, vector<1x8x8xf32>
      tpu.vector_store %arg9[%c0_12, %c0_13, %c0_14], %16 {strides = array<i32>} : memref<1x8x8xf32, #tpu.memory_space<vmem>>, vector<1x8x8xf32>,
    } else {
    }
    %c8_i32 = arith.constant 8 : i32
    %3 = arith.muli %arg2, %c8_i32 : i32
    %c8_i32_1 = arith.constant 8 : i32
    %4 = arith.muli %arg1, %c8_i32_1 : i32
    %c7_i32 = arith.constant 7 : i32
    %5 = arith.addi %4, %c7_i32 : i32
    %6 = arith.cmpi sle, %3, %5 : i32
    %7 = arith.extui %6 : i1 to i32
    %c0_i32_2 = arith.constant 0 : i32
    %8 = arith.cmpi ne, %7, %c0_i32_2 : i32
    scf.if %8 {
      %c0 = arith.constant 0 : index
      %c0_5 = arith.constant 0 : index
      %c0_6 = arith.constant 0 : index
      %12 = vector.load %arg3[%c0, %c0_5, %c0_6] : memref<1x8x8xbf16, #tpu.memory_space<vmem>>, vector<1x8x8xbf16>
      %c0_7 = arith.constant 0 : index
      %c0_8 = arith.constant 0 : index
      %c0_9 = arith.constant 0 : index
      %13 = vector.load %arg4[%c0_7, %c0_8, %c0_9] : memref<1x8x8xbf16, #tpu.memory_space<vmem>>, vector<1x8x8xbf16>
      %c0_10 = arith.constant 0 : index
      %c0_11 = arith.constant 0 : index
      %c0_12 = arith.constant 0 : index
      %14 = vector.load %arg5[%c0_10, %c0_11, %c0_12] : memref<1x8x8xbf16, #tpu.memory_space<vmem>>, vector<1x8x8xbf16>
      "tpu.trace_start"() <{level = 10 : i32, message = "bqd,bkd->bqk"}> : () -> ()
      %cst = arith.constant dense<0.000000e+00> : vector<1x8x8xf32>
      %15 = tpu.matmul %12, %13, %cst {dimension_numbers = #tpu.dot_dimension_numbers<[2], [2], [1], [1], [0, 0, 0, 1, 1, 1], [0], [0]>} : vector<1x8x8xbf16>, vector<1x8x8xbf16>, vector<1x8x8xf32> -> vector<1x8x8xf32>
      "tpu.trace_stop"() : () -> ()
      %c8_i32_13 = arith.constant 8 : i32
      %16 = arith.muli %arg1, %c8_i32_13 : i32
      %17 = tpu.iota {dimensions = array<i32: 1>} : vector<1x8x8xi32>
      %18 = vector.broadcast %16 : i32 to vector<1x8x8xi32>
      %19 = arith.addi %18, %17 : vector<1x8x8xi32>
      %c8_i32_14 = arith.constant 8 : i32
      %20 = arith.muli %arg2, %c8_i32_14 : i32
      %21 = tpu.iota {dimensions = array<i32: 2>} : vector<1x8x8xi32>
      %22 = vector.broadcast %20 : i32 to vector<1x8x8xi32>
      %23 = arith.addi %22, %21 : vector<1x8x8xi32>
      %24 = arith.cmpi sgt, %23, %19 : vector<1x8x8xi32>
      %cst_15 = arith.constant -1.000000e+04 : f32
      %cst_16 = arith.constant 0.000000e+00 : f32
      %25 = vector.broadcast %cst_15 : f32 to vector<1x8x8xf32>
      %26 = vector.broadcast %cst_16 : f32 to vector<1x8x8xf32>
      %27 = arith.select %24, %25, %26 : vector<1x8x8xi1>, vector<1x8x8xf32>
      %28 = arith.addf %15, %27 : vector<1x8x8xf32>
      %c0_17 = arith.constant 0 : index
      %c0_18 = arith.constant 0 : index
      %c0_19 = arith.constant 0 : index
      %29 = vector.load %arg7[%c0_17, %c0_18, %c0_19] : memref<1x8x1xf32, #tpu.memory_space<vmem>>, vector<1x8x1xf32>
      %cst_20 = arith.constant dense<0xFF800000> : vector<1x8xf32>
      %30 = vector.multi_reduction <maximumf>, %28, %cst_20 [2] : vector<1x8x8xf32> to vector<1x8xf32>
      %31 = vector.shape_cast %30 : vector<1x8xf32> to vector<1x8x1xf32>
      %32 = arith.maximumf %29, %31 : vector<1x8x1xf32>
      %33 = arith.subf %29, %32 : vector<1x8x1xf32>
      %34 = math.exp %33 : vector<1x8x1xf32>
      %35 = vector.broadcast %32 : vector<1x8x1xf32> to vector<1x8x8xf32>
      %36 = arith.subf %28, %35 : vector<1x8x8xf32>
      %37 = math.exp %36 : vector<1x8x8xf32>
      %c0_21 = arith.constant 0 : index
      %c0_22 = arith.constant 0 : index
      %c0_23 = arith.constant 0 : index
      %38 = vector.load %arg8[%c0_21, %c0_22, %c0_23] : memref<1x8x1xf32, #tpu.memory_space<vmem>>, vector<1x8x1xf32>
      %39 = arith.mulf %34, %38 : vector<1x8x1xf32>
      %cst_24 = arith.constant dense<0.000000e+00> : vector<1x8xf32>
      %40 = vector.multi_reduction <add>, %37, %cst_24 [2] : vector<1x8x8xf32> to vector<1x8xf32>
      %41 = vector.shape_cast %40 : vector<1x8xf32> to vector<1x8x1xf32>
      %42 = arith.addf %39, %41 : vector<1x8x1xf32>
      %c0_25 = arith.constant 0 : index
      %c0_26 = arith.constant 0 : index
      %c0_27 = arith.constant 0 : index
      %43 = vector.load %arg8[%c0_25, %c0_26, %c0_27] : memref<1x8x1xf32, #tpu.memory_space<vmem>>, vector<1x8x1xf32>
      tpu.vector_store %arg8[%c0_25, %c0_26, %c0_27], %42 {strides = array<i32>} : memref<1x8x1xf32, #tpu.memory_space<vmem>>, vector<1x8x1xf32>,
      %c0_28 = arith.constant 0 : index
      %c0_29 = arith.constant 0 : index
      %c0_30 = arith.constant 0 : index
      %44 = vector.load %arg9[%c0_28, %c0_29, %c0_30] : memref<1x8x8xf32, #tpu.memory_space<vmem>>, vector<1x8x8xf32>
      %45 = vector.broadcast %34 : vector<1x8x1xf32> to vector<1x8x8xf32>
      %46 = arith.mulf %45, %44 : vector<1x8x8xf32>
      %47 = arith.truncf %37 : vector<1x8x8xf32> to vector<1x8x8xbf16>
      "tpu.trace_start"() <{level = 10 : i32, message = "bqk,bkd->bqd"}> : () -> ()
      %cst_31 = arith.constant dense<0.000000e+00> : vector<1x8x8xf32>
      %48 = tpu.matmul %47, %14, %cst_31 {dimension_numbers = #tpu.dot_dimension_numbers<[2], [1], [1], [2], [0, 0, 0, 1, 1, 2], [0], [0]>} : vector<1x8x8xbf16>, vector<1x8x8xbf16>, vector<1x8x8xf32> -> vector<1x8x8xf32>
      "tpu.trace_stop"() : () -> ()
      %49 = arith.addf %46, %48 : vector<1x8x8xf32>
      %c0_32 = arith.constant 0 : index
      %c0_33 = arith.constant 0 : index
      %c0_34 = arith.constant 0 : index
      %50 = vector.load %arg9[%c0_32, %c0_33, %c0_34] : memref<1x8x8xf32, #tpu.memory_space<vmem>>, vector<1x8x8xf32>
      tpu.vector_store %arg9[%c0_32, %c0_33, %c0_34], %49 {strides = array<i32>} : memref<1x8x8xf32, #tpu.memory_space<vmem>>, vector<1x8x8xf32>,
      %c0_35 = arith.constant 0 : index
      %c0_36 = arith.constant 0 : index
      %c0_37 = arith.constant 0 : index
      %51 = vector.load %arg7[%c0_35, %c0_36, %c0_37] : memref<1x8x1xf32, #tpu.memory_space<vmem>>, vector<1x8x1xf32>
      tpu.vector_store %arg7[%c0_35, %c0_36, %c0_37], %32 {strides = array<i32>} : memref<1x8x1xf32, #tpu.memory_space<vmem>>, vector<1x8x1xf32>,
    } else {
    }
    %c0_i32_3 = arith.constant 0 : i32
    %9 = arith.cmpi eq, %arg2, %c0_i32_3 : i32
    %10 = arith.extui %9 : i1 to i32
    %c0_i32_4 = arith.constant 0 : i32
    %11 = arith.cmpi ne, %10, %c0_i32_4 : i32
    scf.if %11 {
      %c0 = arith.constant 0 : index
      %c0_5 = arith.constant 0 : index
      %c0_6 = arith.constant 0 : index
      %12 = vector.load %arg8[%c0, %c0_5, %c0_6] : memref<1x8x1xf32, #tpu.memory_space<vmem>>, vector<1x8x1xf32>
      %13 = tpu.reciprocal %12 {approx = true} : vector<1x8x1xf32> -> vector<1x8x1xf32>
      %c0_7 = arith.constant 0 : index
      %c0_8 = arith.constant 0 : index
      %c0_9 = arith.constant 0 : index
      %14 = vector.load %arg9[%c0_7, %c0_8, %c0_9] : memref<1x8x8xf32, #tpu.memory_space<vmem>>, vector<1x8x8xf32>
      %15 = vector.broadcast %13 : vector<1x8x1xf32> to vector<1x8x8xf32>
      %16 = arith.mulf %14, %15 : vector<1x8x8xf32>
      %17 = arith.truncf %16 : vector<1x8x8xf32> to vector<1x8x8xbf16>
      %c0_10 = arith.constant 0 : index
      %c0_11 = arith.constant 0 : index
      %c0_12 = arith.constant 0 : index
      %18 = vector.load %arg6[%c0_10, %c0_11, %c0_12] : memref<1x8x8xbf16, #tpu.memory_space<vmem>>, vector<1x8x8xbf16>
      tpu.vector_store %arg6[%c0_10, %c0_11, %c0_12], %17 {strides = array<i32>} : memref<1x8x8xbf16, #tpu.memory_space<vmem>>, vector<1x8x8xbf16>,
    } else {
    }
    return
  }
  func.func @transform_0(%arg0: i32, %arg1: i32, %arg2: i32) -> (i32, i32, i32) {
    %c0_i32 = arith.constant 0 : i32
    %c0_i32_0 = arith.constant 0 : i32
    return %arg0, %arg1, %c0_i32 : i32, i32, i32
  }
  func.func @transform_1(%arg0: i32, %arg1: i32, %arg2: i32) -> (i32, i32, i32) {
    %c0_i32 = arith.constant 0 : i32
    %c0_i32_0 = arith.constant 0 : i32
    return %arg0, %arg2, %c0_i32 : i32, i32, i32
  }
  func.func @transform_2(%arg0: i32, %arg1: i32, %arg2: i32) -> (i32, i32, i32) {
    %c0_i32 = arith.constant 0 : i32
    %c0_i32_0 = arith.constant 0 : i32
    return %arg0, %arg2, %c0_i32 : i32, i32, i32
  }
  func.func @transform_3(%arg0: i32, %arg1: i32, %arg2: i32) -> (i32, i32, i32) {
    %c0_i32 = arith.constant 0 : i32
    %c0_i32_0 = arith.constant 0 : i32
    return %arg0, %arg1, %c0_i32 : i32, i32, i32
  }
}

module attributes {stable_mosaic.version = 11 : i64} {
  func.func @out_proj_kernel(%arg0: i32, %arg1: memref<8x32xbf16, #tpu.memory_space<vmem>>, %arg2: memref<32x32xbf16, #tpu.memory_space<vmem>>, %arg3: memref<1x32xbf16, #tpu.memory_space<vmem>>, %arg4: memref<8x32xbf16, #tpu.memory_space<vmem>>) attributes {dimension_semantics = [#tpu.dimension_semantics<parallel>], iteration_bounds = array<i64: 1>, scalar_prefetch = 0 : i64, scratch_operands = 0 : i64, tpu.core_type = #tpu.core_type<tc>, window_params = [{transform_indices = @transform_0, window_bounds = array<i64: 8, 32>}, {pipeline_mode = #tpu.pipeline_mode<synchronous>, transform_indices = @transform_1, window_bounds = array<i64: 32, 32>}, {pipeline_mode = #tpu.pipeline_mode<synchronous>, transform_indices = @transform_2, window_bounds = array<i64: 1, 32>}, {transform_indices = @transform_3, window_bounds = array<i64: 8, 32>}]} {
    %c0 = arith.constant 0 : index
    %c0_0 = arith.constant 0 : index
    %0 = vector.load %arg1[%c0, %c0_0] : memref<8x32xbf16, #tpu.memory_space<vmem>>, vector<8x32xbf16>
    %c0_1 = arith.constant 0 : index
    %c0_2 = arith.constant 0 : index
    %1 = vector.load %arg2[%c0_1, %c0_2] : memref<32x32xbf16, #tpu.memory_space<vmem>>, vector<32x32xbf16>
    %cst = arith.constant dense<0.000000e+00> : vector<8x32xf32>
    %2 = tpu.matmul %0, %1, %cst {dimension_numbers = #tpu.dot_dimension_numbers<[1], [0], [0], [1], [0, 0, 1, 1], [], []>} : vector<8x32xbf16>, vector<32x32xbf16>, vector<8x32xf32> -> vector<8x32xf32>
    %c0_3 = arith.constant 0 : index
    %c0_4 = arith.constant 0 : index
    %3 = vector.load %arg3[%c0_3, %c0_4] : memref<1x32xbf16, #tpu.memory_space<vmem>>, vector<1x32xbf16>
    %4 = arith.extf %3 : vector<1x32xbf16> to vector<1x32xf32>
    %5 = vector.broadcast %4 : vector<1x32xf32> to vector<8x32xf32>
    %6 = arith.addf %2, %5 : vector<8x32xf32>
    %7 = arith.truncf %6 : vector<8x32xf32> to vector<8x32xbf16>
    %c0_5 = arith.constant 0 : index
    %c0_6 = arith.constant 0 : index
    %8 = vector.load %arg4[%c0_5, %c0_6] : memref<8x32xbf16, #tpu.memory_space<vmem>>, vector<8x32xbf16>
    tpu.vector_store %arg4[%c0_5, %c0_6], %7 {strides = array<i32>} : memref<8x32xbf16, #tpu.memory_space<vmem>>, vector<8x32xbf16>,
    return
  }
  func.func @transform_0(%arg0: i32) -> (i32, i32) {
    %c0_i32 = arith.constant 0 : i32
    %c0_i32_0 = arith.constant 0 : i32
    return %arg0, %c0_i32 : i32, i32
  }
  func.func @transform_1(%arg0: i32) -> (i32, i32) {
    %c0_i32 = arith.constant 0 : i32
    %c0_i32_0 = arith.constant 0 : i32
    %c0_i32_1 = arith.constant 0 : i32
    return %c0_i32, %c0_i32_0 : i32, i32
  }
  func.func @transform_2(%arg0: i32) -> (i32, i32) {
    %c0_i32 = arith.constant 0 : i32
    %c0_i32_0 = arith.constant 0 : i32
    %c0_i32_1 = arith.constant 0 : i32
    return %c0_i32, %c0_i32_0 : i32, i32
  }
  func.func @transform_3(%arg0: i32) -> (i32, i32) {
    %c0_i32 = arith.constant 0 : i32
    %c0_i32_0 = arith.constant 0 : i32
    return %arg0, %c0_i32 : i32, i32
  }
}

</mosaic_0001>

<bundles_post_ra>
// kernel: mha_forward.3
= control target key start
LH: loop header
LB: loop body
LE: loop exit
PB: predicated region body
PF: predicated region fallthrough
CT: control target
= control target key end

     0   :  { %v291_v0 = vmov 0.0   ;;  %vm292_vm0 = vmmov 0   ;;  %vm53_vm1 = vcmask 261120   ;;  %v37_v8 = vlaneseq  ;;  %s388_s1 = inlined_call_operand.vmem [shape: bf16[32,32], index: 1, kind: input, shape index: {}]   ;;  %s389_s2 = inlined_call_operand.vmem [shape: bf16[32,32], index: 2, kind: input, shape index: {}]   ;;  %s390_s3 = inlined_call_operand.vmem [shape: bf16[32,32], index: 3, kind: input, shape index: {}]   ;;  %s391_s0 = inlined_call_operand.vmem [shape: bf16[8,32], index: 0, kind: input, shape index: {}]   ;;  %s392_s4 = inlined_call_operand.vmem [shape: bf16[1,32], index: 4, kind: input, shape index: {}]   ;;  %s393_s5 = inlined_call_operand.vmem [shape: bf16[1,32], index: 5, kind: input, shape index: {}]   ;;  %s394_s6 = inlined_call_operand.vmem [shape: bf16[1,32], index: 6, kind: input, shape index: {}]   ;;  %s395_s7 = inlined_call_operand.vmem [shape: bf16[8,32], index: 7, kind: output, shape index: {0}]   ;;  %s396_s8 = inlined_call_operand.vmem [shape: bf16[8,32], index: 8, kind: output, shape index: {1}]   ;;  %s397_s9 = inlined_call_operand.vmem [shape: bf16[8,32], index: 9, kind: output, shape index: {2}]  }
   0x1   :  { %259 = vmatprep.subr.bf16.mxu0 %v291_v0  ;;  %v285_v1 = vld [vmem:[%s388_s1] sm:$0xff]   ;;  %267 = vmatprep.subr.bf16.mxu1 %v291_v0  ;;  %v286_v2 = vld [vmem:[%s388_s1 + $0x8] sm:$0xff]   ;;  %vm99_vm2 = vcmask 257024  }
   0x2   :  { %263 = vmatprep.mubr.msk.bf16.mxu0 %vm292_vm0, %v291_v0  ;;  %271 = vmatprep.mubr.msk.bf16.mxu1 %vm292_vm0, %v291_v0  ;;  %v287_v3 = vld [vmem:[%s389_s2] sm:$0xff]   ;;  %v289_v4 = vld [vmem:[%s389_s2 + $0x8] sm:$0xff]   ;;  %v38_v9 = vshrl.u32 %v37_v8, 7 }
   0x3   :  { %260 = vmatpush3.bf16.msra.mxu0 %v285_v1  ;;  %268 = vmatpush3.bf16.msra.mxu1 %v287_v3  ;;  %v30_v5 = vld [vmem:[%s391_s0] sm:$0xf]  ;;  %v290_v7 = vld [vmem:[%s390_s3 + $0x8] sm:$0xff]  }
   0x4   :  { %261 = vmatprep.subr.bf16.mxu0 %v291_v0  ;;  %269 = vmatprep.subr.bf16.mxu1 %v291_v0  ;;  %v288_v6 = vld [vmem:[%s390_s3] sm:$0xff]   ;;  %v39_v13 = vsub.s32 0, %v38_v9 }
   0x5   :  { %v35_v10 = vld [vmem:[%s392_s4] sm:$0x1] }
   0x6   :  { %v105_v11 = vld [vmem:[%s393_s5] sm:$0x1]  ;;  %v36_v12 = vunpack.c.l.bf16 %v35_v10 }
   0x7   :  { %262 = vmatpush3.bf16.msra.mxu0 %v286_v2  ;;  %270 = vmatpush3.bf16.msra.mxu1 %v289_v4  ;;  %v106_v14 = vunpack.c.l.bf16 %v105_v11  ;;  %v169_v16 = vld [vmem:[%s394_s6] sm:$0x1] }
   0x8   :  { %275 = vmatprep.subr.bf16.mxu0 %v291_v0  ;;  %v40_v15 = vrot.slane %v36_v12, %v39_v13  ;;  %v170_v21 = vunpack.c.l.bf16 %v169_v16 }
   0x9   :  { %v110_v17 = vrot.slane %v106_v14, %v39_v13 }
   0xa   :  { %264 = vmatmul.mubr.msk.bf16.vlgmr.msra.gmra.mrb[0].mxu0 %vm53_vm1, %v30_v5  ;;  %272 = vmatmul.mubr.msk.bf16.vlgmr.msra.gmra.mrb[0].mxu1 %vm53_vm1, %v30_v5  ;;  %v174_v31 = vrot.slane %v170_v21, %v39_v13 }
   0xb   :  { %276 = vmatpush3.bf16.msra.mxu0 %v288_v6  ;;  %279 = vmatprep.mubr.msk.bf16.mxu0 %vm292_vm0, %v291_v0 }
   0xc   :  { %277 = vmatprep.subr.bf16.mxu0 %v291_v0 }
   0xf   :  { %278 = vmatpush3.bf16.msra.mxu0 %v290_v7 }
  0x12   :  { %280 = vmatmul.mubr.msk.bf16.vlgmr.msra.gmra.mrb[4].mxu0 %vm53_vm1, %v30_v5 }
  0xdd   :  { %v91_v18 = vpop.f32.mrb[0].mxu0  ;;  %v157_v23 = vpop.f32.mrb[0].mxu1 }
  0xde   :  { %v92_v19 = vadd.f32 %v91_v18, %v40_v15  ;;  %v265_v20 = vpop.f32.mrb[1].mxu0  ;;  %v158_v26 = vadd.f32 %v157_v23, %v110_v17  ;;  %v273_v27 = vpop.f32.mrb[1].mxu1 }
  0xdf   :  { %v94_v22 = vpop.f32.mrb[2].mxu0  ;;  %v160_v28 = vpop.f32.mrb[2].mxu1 }
  0xe0   :  { %v97_v24 = vmul.f32 0.35355338, %v92_v19  ;;  %v266_v25 = vpop.f32.mrb[3].mxu0  ;;  %v163_v30 = vpack.c.bf16 %v158_v26, %v158_v26  ;;  %v274_v32 = vpop.f32.mrb[3].mxu1 }
  0xe2   :  { %v98_v29 = vpack.c.bf16 %v97_v24, %v97_v24  ;;  %164 = vst.msk [vmem:[%s396_s8] sm:$0xf] %vm99_vm2, %v163_v30 }
  0xe4   :  { %100 = vst.msk [vmem:[%s395_s7] sm:$0xf] %vm99_vm2, %v98_v29 }
  0xe5   :  { %v221_v33 = vpop.f32.mrb[4].mxu0 }
  0xe6   :  { %v222_v34 = vadd.f32 %v221_v33, %v174_v31  ;;  %v281_v35 = vpop.f32.mrb[5].mxu0 }
  0xe7   :  { %v224_v36 = vpop.f32.mrb[6].mxu0 }
  0xe8   :  { %v227_v37 = vpack.c.bf16 %v222_v34, %v222_v34  ;;  %v282_v38 = vpop.f32.mrb[7].mxu0 }
  0xea   :  { %228 = vst.msk [vmem:[%s397_s9] sm:$0xf] %vm99_vm2, %v227_v37 }

// kernel: mha_forward.5
= control target key start
LH: loop header
LB: loop body
LE: loop exit
PB: predicated region body
PF: predicated region fallthrough
CT: control target
= control target key end

     0   :  { %v143_v1 = vmov 0.0   ;;  %vm144_vm0 = vmmov 0   ;;  %s190_s0 = inlined_call_operand.vmem [shape: bf16[8,32], index: 0, kind: input, shape index: {}]   ;;  %s191_s1 = inlined_call_operand.vmem [shape: bf16[32,32], index: 1, kind: input, shape index: {}]   ;;  %s192_s2 = inlined_call_operand.vmem [shape: bf16[1,32], index: 2, kind: input, shape index: {}]   ;;  %s193_s3 = inlined_call_operand.hbm [shape: bf16[8,32], index: 3, kind: output, shape index: {}]  }
   0x1   :  { %v117_v0 = vld [vmem:[%s191_s1] sm:$0xff]   ;;  %106 = vmatprep.subr.bf16.mxu0 %v143_v1  ;;  %v118_v2 = vld [vmem:[%s191_s1 + $0x8] sm:$0xff]   ;;  %110 = vmatprep.mubr.msk.bf16.mxu0 %vm144_vm0, %v143_v1 }
   0x2   :  { %107 = vmatpush3.bf16.msra.mxu0 %v117_v0 }
   0x3   :  { %108 = vmatprep.subr.bf16.mxu0 %v143_v1 }
   0x4   :  { %8 = vsyncpa [#allocation3], 0  ;;  %v16_v3 = vld [vmem:[%s190_s0] sm:$0xf]  ;;  %vm39_vm1 = vcmask 261120   ;;  %v23_v4 = vlaneseq  ;;  %s145_s1 = smov [#allocation2]  }
   0x5   :  { %v21_v6 = vld [vmem:[%s192_s2] sm:$0x1]  ;;  %s92_s20 = sshll.u32 %s145_s1, 4  ;;  %vm84_vm2 = vcmask 257024   ;;  %s93_s20 = int_to_ptr.vmem [resolvable:$true] %s92_s20 }
   0x6   :  { %109 = vmatpush3.bf16.msra.mxu0 %v118_v2  ;;  %v24_v5 = vshrl.u32 %v23_v4, 7  ;;  %v22_v7 = vunpack.c.l.bf16 %v21_v6  ;;  %s119_s0 = scalar_lea.vmem %s93_s20, 64  ;;  %p124_p1 = scmp.lt.s32.totalorder %s93_s20, %s93_s20 }
   0x7   :  { %p120_p0 = scmp.ne.s32.totalorder %s93_s20, %s119_s0  ;;  %p125_p2 = scmp.lt.s32.totalorder %s119_s0, %s119_s0 }
   0x8   :  { %v25_v8 = vsub.s32 0, %v24_v5 }
   0x9   :  { %111 = vmatmul.mubr.msk.bf16.vlgmr.msra.gmra.mrb[0].mxu0 %vm39_vm1, %v16_v3  ;;  %p126_p3 = por %p125_p2, %p124_p1 }
   0xa   :  { %v26_v9 = vrot.slane %v22_v7, %v25_v8 }
   0xb   :  { %p127_p4 = pnand %p126_p3, %p120_p0 }
  0xdc   :  { %v77_v10 = vpop.f32.mrb[0].mxu0 }
  0xdd   :  { %v78_v11 = vadd.f32 %v77_v10, %v26_v9  ;;  %v112_v12 = vpop.f32.mrb[1].mxu0 }
  0xde   :  { %v80_v13 = vpop.f32.mrb[2].mxu0 }
  0xdf   :  { %v83_v14 = vpack.c.bf16 %v78_v11, %v78_v11  ;;  %v113_v15 = vpop.f32.mrb[3].mxu0 }
  0xe1   :  { %85 = vst.msk [vmem:[#allocation2] sm:$0xf] %vm84_vm2, %v83_v14 }
  0xe2   :  { %130 = shalt.err (!%p127_p4)
}
  0xe3   :  { %s131_s22 = scalar_lea.hbm %s193_s3, 64 }
  0xe4   :  { %p132_p5 = scmp.ne.s32.totalorder %s193_s3, %s131_s22  ;;  %p135_p6 = scmp.lt.u32.totalorder %s131_s22, %s193_s3 }
  0xe6   :  { %p137_p7 = pnand %p135_p6, %p132_p5 }
  0xe8   :  { %140 = shalt.err (!%p137_p7)
}
  0xe9   :  { %95 = dma.vmem_to_hbm [thread:$0]  %s93_s20, 64, %s193_s3, [#allocation3]  }
  0xea   :  { %141 = dma.done.wait [#allocation3], 64  }
  0xeb   :  { %142 = vsyncadd [#allocation3], 4294967232 }
  0xec   :  { %99 = vsyncpa [#allocation3], 1 }

// kernel: mha_forward.4
= control target key start
LH: loop header
LB: loop body
LE: loop exit
PB: predicated region body
PF: predicated region fallthrough
CT: control target
= control target key end

     0   :  { %s654_s12 = smov 0   ;;  %s656_s13 = smov 0   ;;  %s710_s0 = inlined_call_operand.vmem [shape: bf16[4,8,8], index: 0, kind: input, shape index: {}]   ;;  %s711_s1 = inlined_call_operand.vmem [shape: bf16[4,8,8], index: 1, kind: input, shape index: {}]   ;;  %s712_s2 = inlined_call_operand.vmem [shape: bf16[4,8,8], index: 2, kind: input, shape index: {}]   ;;  %s713_s3 = inlined_call_operand.vmem [shape: bf16[4,8,8], index: 3, kind: output, shape index: {}]  }
   0x1   :  { %s658_s14 = smov 0  }
   0x2 LB: > { %s32_s15 = sadd.s32 1, %s624_s13  ;;  %p545_p0 = scmp.ge.s32.totalorder %s628_s14, 1  ;;  %s628_s14 = sphi %s658_s14, %s13_s14   ;;  %s624_s13 = sphi %s656_s13, %s715_s13   ;;  %s620_s12 = sphi %s654_s12, %s714_s12  }
   0x3   : > { %p34_p1 = scmp.ge.s32.totalorder %s32_s15, 4  ;;  %p190_p2 = scmp.lt.s32.totalorder %s628_s14, 5 }
   0x5   : > { %s717_s15 = smov (%p34_p1, %s32_s15), 0  ;;  %p191_p3 = pnand %p545_p0, %p190_p2 }
   0x6   : > { %p232_p4 = scmp.lt.s32.totalorder (!%p191_p3), %s620_s12, 3  ;;  %vm268_vm0 = vcmask (!%p191_p3), 64512   ;;  %v630_v0 = vmov (!%p191_p3), 0.0   ;;  %vm631_vm1 = vmmov (!%p191_p3), 0   ;;  %vm265_vm2 = vcmask (!%p191_p3), 7168  }
   0x7   : > { %194 = sbr.rel (%p191_p3) target bundleno = 825 (0x339), region = 32  ;;  %558 = vmatprep.subr.bf16.mxu0 (!%p191_p3), %v630_v0  ;;  %269 = vst.msk [vmem:[#allocation4] sm:$0xff] (!%p191_p3), %vm268_vm0, %v630_v0  ;;  %560 = vmatprep.mubr.msk.bf16.mxu0 (!%p191_p3), %vm631_vm1, %v630_v0  ;;  %v632_v4 = vmov (!%p191_p3), -1e+30   ;;  %v280_v5 = vlaneseq (!%p191_p3)  ;;  %v633_v15 = vmov (!%p191_p3), 0   ;;  %vm372_vm4 = vcmask (!%p191_p3), 1043456  }
   0x8   : > { %564 = vmatprep.subr.bf16.mxu1 (!%p191_p3), %v630_v0  ;;  %566 = vmatprep.mubr.msk.bf16.mxu1 (!%p191_p3), %vm631_vm1, %v630_v0  ;;  %266 = vst.msk [vmem:[#allocation2] sm:$0xff] (!%p191_p3), %vm265_vm2, %v632_v4  ;;  %267 = vst.msk [vmem:[#allocation3] sm:$0xff] (!%p191_p3), %vm265_vm2, %v630_v0  ;;  %vm432_vm5 = vcmask (!%p191_p3), 60416  }
   0x9   : > { %v281_v6 = vshrl.u32 (!%p191_p3), %v280_v5, 7  ;;  %v285_v7 = vand.u32 (!%p191_p3), 127, %v280_v5  ;;  %598 = vset.pattern.permute.xlu0 (!%p191_p3), %v633_v15  ;;  %599 = vset.pattern.permute.xlu1 (!%p191_p3), %v633_v15 }
   0xb   : > { %vm288_vm3 = vcmp.gt.s32.totalorder (!%p191_p3), %v285_v7, %v281_v6 }
   0xc   : > { %v289_v8 = vsel (!%p191_p3), %vm288_vm3, -10000.0, %v630_v0 }
   0xe   : > { %s719_s12 = smov (!%p232_p4, %s620_s12), 3  ;;  %v361_v36 = vld [vmem:[#allocation4] sm:$0xff] }
   0xf   : > { %s673_s16 = sshll.u32 %s719_s12, 2  ;;  %v337_v16 = vld [vmem:[#allocation2] sm:$0xff]  ;;  %v353_v30 = vld [vmem:[#allocation3] sm:$0xff] }
  0x10   : > { %s245_s19 = scalar_lea.vmem %s711_s1, %s673_s16  ;;  %s238_s22 = scalar_lea.vmem %s710_s0, %s673_s16 }
  0x11   : > { %v278_v1 = vld [vmem:[%s245_s19] sm:$0xf]  ;;  %s252_s25 = scalar_lea.vmem %s712_s2, %s673_s16  ;;  %s259_s28 = scalar_lea.vmem %s713_s3, %s673_s16 }
  0x12   : > { %v295_v2 = vsel %vm268_vm0, %v278_v1, 0  ;;  %v277_v3 = vld [vmem:[%s238_s22] sm:$0xf] }
  0x13   : > { %559 = vmatpush3.bf16.xpose.msra.mxu0 %v295_v2  ;;  %v279_v20 = vld [vmem:[%s252_s25] sm:$0xf] }
  0x14   : > { %v374_v21 = vsel %vm372_vm4, %v279_v20, 0 }
  0x15   : > { %565 = vmatpush3.bf16.msra.mxu1 %v374_v21 }
  0x1a   : > { %561 = vmatmul.mubr.msk.bf16.vlgmr.msra.gmra.mrb[0].mxu0 %vm268_vm0, %v277_v3 }
  0xed   : > { %v331_v9 = vpop.f32.mrb[0].mxu0 }
  0xee   : > { %v332_v10 = vadd.f32 %v331_v9, %v289_v8  ;;  %v562_v11 = vpop.f32.mrb[1].mxu0 }
  0xef   : > { %v334_v12 = vpop.f32.mrb[2].mxu0 }
  0xf0   : > { %v563_v13 = vpop.f32.mrb[3].mxu0  ;;  %v338_v14 = vsel %vm268_vm0, %v332_v10, -inf }
  0xf1   : > { %339 = vmax.xlane.f32.xlu0 %v338_v14 }
 0x17e   : > { %v340_v17 = vpop.xlane.xlu0 %339 }
 0x17f   : > { %v341_v18 = vmax.f32 %v337_v16, %v340_v17 }
 0x181   : > { %v342_v19 = vsub.f32 %v337_v16, %v341_v18  ;;  %418 = vst.msk [vmem:[#allocation2] sm:$0xff] %vm265_vm2, %v341_v18  ;;  %347 = vperm.xlu0 %598, %v341_v18  }
 0x183   : > { %v343_v28 = vmul.f32 1.442695, %v342_v19 }
 0x200   : > { %v348_v22 = vpop.permute.xlu0 %347 }
 0x201   : > { %v350_v23 = vsub.f32 %v332_v10, %v348_v22 }
 0x203   : > { %v351_v24 = vmul.f32 1.442695, %v350_v23 }
 0x205   : > { %600 = vpow2.f32 %v351_v24 }
 0x206   : > { %602 = vpow2.f32 %v343_v28 }
 0x20f   : > { %v601_v25 = vpop.eup %600 }
 0x210   : > { %v355_v26 = vsel %vm268_vm0, %v601_v25, 0.0  ;;  %v368_v27 = vpack.c.bf16 %v601_v25, %v601_v25  ;;  %v603_v29 = vpop.eup %602 }
 0x211   : > { %356 = vadd.xlane.f32.xlu1 %v355_v26  ;;  %v354_v31 = vmul.f32 %v603_v29, %v353_v30 }
 0x212   : > { %567 = vmatmul.mubr.msk.bf16.vlgmr.msra.gmra.mrb[0].mxu1 %vm268_vm0, %v368_v27 }
 0x222   : > { %364 = vperm.xlu1 %599, %v603_v29  }
 0x29e   : > { %v357_v32 = vpop.xlane.xlu1 %356 }
 0x29f   : > { %v358_v33 = vadd.f32 %v357_v32, %v354_v31 }
 0x2a1   : > { %360 = vst.msk [vmem:[#allocation3] sm:$0xff] %vm265_vm2, %v358_v33 }
 0x2a2   : > { %v365_v37 = vpop.permute.xlu1 %364 }
 0x2a3   : > { %v367_v38 = vmul.f32 %v365_v37, %v361_v36 }
 0x2a8   : > { %v422_v34 = vld [vmem:[#allocation3] sm:$0xff] }
 0x2a9   : > { %604 = vrcp.f32 %v422_v34 }
 0x2b3   : > { %v605_v35 = vpop.eup %604 }
 0x2b4   : > { %427 = vperm.xlu1 %599, %v605_v35  }
 0x2e5   : > { %v410_v39 = vpop.f32.mrb[0].mxu1 }
 0x2e6   : > { %v416_v40 = vadd.f32 %v410_v39, %v367_v38  ;;  %v568_v41 = vpop.f32.mrb[1].mxu1 }
 0x2e7   : > { %v413_v42 = vpop.f32.mrb[2].mxu1 }
 0x2e8   : > { %417 = vst.msk [vmem:[#allocation4] sm:$0xff] %vm268_vm0, %v416_v40  ;;  %v569_v43 = vpop.f32.mrb[3].mxu1 }
 0x2ef   : > { %v424_v44 = vld [vmem:[#allocation4] sm:$0xff] }
 0x333   : > { %v428_v45 = vpop.permute.xlu1 %427 }
 0x334   : > { %v430_v46 = vmul.f32 %v428_v45, %v424_v44 }
 0x336   : > { %v431_v47 = vpack.c.bf16 %v430_v46, %v430_v46 }
 0x338   : > { %433 = vst.msk [vmem:[%s259_s28] sm:$0xf] %vm432_vm5, %v431_v47 }
 0x339 PF: > { %s13_s14 = sadd.s32 1, %s628_s14   ;;  %s714_s12 = smov %s624_s13 }
 0x33a   : > { %p10_p5 = scmp.ge.s32.totalorder %s13_s14, 6   ;;  %s715_s13 = smov %s717_s15 }
 0x33c   :  { %12 = sbr.rel (!%p10_p5) target bundleno = 2 (0x2), region = 80 }

</bundles_post_ra>
